<compile_context>
chip_gen: v5e
topology: v5e:2x2
jax: 0.10.0
libtpu: 0.0.40
codegen_flags: <defaults>
</compile_context>

<pallas_src>
import jax
import jax.numpy as jnp
import numpy as np
from jax.experimental import pallas as pl
from jax.experimental.pallas import tpu as pltpu


# ----------------------------------------------------------------------------
# In-kernel helpers: Conv1d(k=3, padding=1) tap views via lane roll + edge mask
# ----------------------------------------------------------------------------
def _tap_prev(v):
    # out[:, f] = v[:, f - 1], zero at f == 0        (conv tap k = 0)
    col = jax.lax.broadcasted_iota(jnp.int32, v.shape, 1)
    return jnp.where(col == 0, 0.0, pltpu.roll(v, 1, axis=1))


def _tap_next(v):
    # out[:, f] = v[:, f + 1], zero at f == F - 1    (conv tap k = 2)
    n = v.shape[1]
    col = jax.lax.broadcasted_iota(jnp.int32, v.shape, 1)
    return jnp.where(col == n - 1, 0.0, pltpu.roll(v, n - 1, axis=1))


# ----------------------------------------------------------------------------
# Kernel A: ConvTranspose + pad + concat + conv1  (+ BN1 partial sums)
# ----------------------------------------------------------------------------
def _up_conv1_kernel(x1_ref, x2_ref, wup_ref, bup_ref, e0_ref, e1_ref,
                     w1s_ref, b1_ref, h1_ref, s1_ref, q1_ref):
    ch = x2_ref.shape[1]
    x1 = x1_ref[0]                                              # (Cin, L1)
    # Two-phase transposed conv as one stacked matmul: rows [0:ch] = phase 0
    # (even output positions), rows [ch:2ch] = phase 1 (odd positions).
    y = jnp.dot(wup_ref[...], x1, preferred_element_type=jnp.float32) + bup_ref[...]
    # Interleave + length-pad via one-hot scatter matmuls (E rows are one-hot,
    # so the bias lands only on real, non-padded positions).  -> (Chalf, F)
    up = (jnp.dot(y[:ch], e0_ref[...], preferred_element_type=jnp.float32)
          + jnp.dot(y[ch:], e1_ref[...], preferred_element_type=jnp.float32))
    x2 = x2_ref[0]                                              # (Chalf, F)
    # Stack the 3 taps of both channel groups -> one deep MXU contraction.
    xs = jnp.concatenate([_tap_prev(x2), x2, _tap_next(x2),
                          _tap_prev(up), up, _tap_next(up)], axis=0)
    h1 = jnp.dot(w1s_ref[...], xs, preferred_element_type=jnp.float32) + b1_ref[...]
    h1_ref[0] = h1
    s1_ref[0] = jnp.sum(h1, axis=1, keepdims=True)
    q1_ref[0] = jnp.sum(h1 * h1, axis=1, keepdims=True)


# ----------------------------------------------------------------------------
# Kernel B: BN1-affine + ReLU fused into conv2  (+ BN2 partial sums)
# ----------------------------------------------------------------------------
def _bnrelu_conv2_kernel(h1_ref, sc1_ref, sh1_ref, w2s_ref, b2_ref,
                         h2_ref, s2_ref, q2_ref):
    a = jnp.maximum(h1_ref[0] * sc1_ref[...] + sh1_ref[...], 0.0)   # (Cout, F)
    xs = jnp.concatenate([_tap_prev(a), a, _tap_next(a)], axis=0)   # (3*Cout, F)
    h2 = jnp.dot(w2s_ref[...], xs, preferred_element_type=jnp.float32) + b2_ref[...]
    h2_ref[0] = h2
    s2_ref[0] = jnp.sum(h2, axis=1, keepdims=True)
    q2_ref[0] = jnp.sum(h2 * h2, axis=1, keepdims=True)


# ----------------------------------------------------------------------------
# Kernel C: BN2-affine + channel-attention gate + ReLU
# ----------------------------------------------------------------------------
def _bn_attn_relu_kernel(h_ref, sc_ref, sh_ref, g_ref, o_ref):
    # TODO(synk): per-channel scale/shift and the per-batch gate could live in
    # SMEM; kept as tiny (C,1) VMEM blocks for simplicity.
    z = h_ref[0] * sc_ref[...] + sh_ref[...]
    o_ref[0] = jnp.maximum(z * g_ref[0], 0.0)


# ----------------------------------------------------------------------------
# Parameter preparation (done once, outside the forward)
# ----------------------------------------------------------------------------
def prepare_params(params):
    upw = params["up_w"]                                        # (Cin, Ch, 2)
    ch = upw.shape[1]
    wup = jnp.concatenate([upw[:, :, 0].T, upw[:, :, 1].T], axis=0)     # (2Ch, Cin)
    bup = jnp.concatenate([params["up_b"], params["up_b"]]).reshape(2 * ch, 1)
    w1 = params["conv1_w"]                                      # (Cout, Cin, 3)
    w1s = jnp.concatenate([w1[:, :ch, 0], w1[:, :ch, 1], w1[:, :ch, 2],
                           w1[:, ch:, 0], w1[:, ch:, 1], w1[:, ch:, 2]], axis=1)
    w2 = params["conv2_w"]                                      # (Cout, Cout, 3)
    w2s = jnp.concatenate([w2[:, :, 0], w2[:, :, 1], w2[:, :, 2]], axis=1)
    return {
        "wup": wup, "bup": bup,
        "w1s": w1s, "b1": params["conv1_b"].reshape(-1, 1),
        "w2s": w2s, "b2": params["conv2_b"].reshape(-1, 1),
        "bn1_g": params["bn1_g"], "bn1_b": params["bn1_b"],
        "bn2_g": params["bn2_g"], "bn2_b": params["bn2_b"],
        "fc1_w": params["fc1_w"], "fc2_w": params["fc2_w"],
    }


def _bn_affine_from_sums(ssum, ssq, gamma, beta, count, eps=1e-5):
    # Train-mode BatchNorm (biased stats over (B, L)) from per-batch partial
    # sums emitted by the kernels -> per-channel affine (scale, shift).
    tot = jnp.sum(ssum[:, :, 0], axis=0)
    totq = jnp.sum(ssq[:, :, 0], axis=0)
    mean = tot / count
    var = jnp.maximum(totq / count - mean * mean, 0.0)
    scale = gamma / jnp.sqrt(var + eps)
    shift = beta - mean * scale
    return scale.reshape(-1, 1), shift.reshape(-1, 1)


# ----------------------------------------------------------------------------
# Full `Up.forward`
# ----------------------------------------------------------------------------
def _parallel():
    return pltpu.CompilerParams(dimension_semantics=("parallel",))


@jax.jit
def up_forward(prep, x1, x2):
    B, cin, L1 = x1.shape
    ch = cin // 2
    F = x2.shape[2]
    cout = prep["b1"].shape[0]
    diff = F - 2 * L1
    assert diff >= 0, "x2 must be at least as long as the upsampled x1"
    P = diff // 2

    # One-hot scatter matrices: interleave phase-0 / phase-1 ConvTranspose
    # outputs directly into the (length-padded) conv1-input positions.
    idx = np.arange(L1)
    e0 = np.zeros((L1, F), np.float32)
    e1 = np.zeros((L1, F), np.float32)
    e0[idx, P + 2 * idx] = 1.0
    e1[idx, P + 2 * idx + 1] = 1.0
    e0 = jnp.asarray(e0)
    e1 = jnp.asarray(e1)

    # --- Kernel A: up + pad + concat + conv1 (+ sums) ------------------------
    h1, s1, q1 = pl.pallas_call(
        _up_conv1_kernel,
        grid=(B,),
        in_specs=[
            pl.BlockSpec((1, cin, L1), lambda i: (i, 0, 0)),
            pl.BlockSpec((1, ch, F), lambda i: (i, 0, 0)),
            pl.BlockSpec((2 * ch, cin), lambda i: (0, 0)),
            pl.BlockSpec((2 * ch, 1), lambda i: (0, 0)),
            pl.BlockSpec((L1, F), lambda i: (0, 0)),
            pl.BlockSpec((L1, F), lambda i: (0, 0)),
            pl.BlockSpec((cout, 3 * cin), lambda i: (0, 0)),
            pl.BlockSpec((cout, 1), lambda i: (0, 0)),
        ],
        out_specs=[
            pl.BlockSpec((1, cout, F), lambda i: (i, 0, 0)),
            pl.BlockSpec((1, cout, 1), lambda i: (i, 0, 0)),
            pl.BlockSpec((1, cout, 1), lambda i: (i, 0, 0)),
        ],
        out_shape=[
            jax.ShapeDtypeStruct((B, cout, F), jnp.float32),
            jax.ShapeDtypeStruct((B, cout, 1), jnp.float32),
            jax.ShapeDtypeStruct((B, cout, 1), jnp.float32),
        ],
        compiler_params=_parallel(),
    )(x1, x2, prep["wup"], prep["bup"], e0, e1, prep["w1s"], prep["b1"])

    sc1, sh1 = _bn_affine_from_sums(s1, q1, prep["bn1_g"], prep["bn1_b"], B * F)

    # --- Kernel B: BN1 + ReLU + conv2 (+ sums) --------------------------------
    h2, s2, q2 = pl.pallas_call(
        _bnrelu_conv2_kernel,
        grid=(B,),
        in_specs=[
            pl.BlockSpec((1, cout, F), lambda i: (i, 0, 0)),
            pl.BlockSpec((cout, 1), lambda i: (0, 0)),
            pl.BlockSpec((cout, 1), lambda i: (0, 0)),
            pl.BlockSpec((cout, 3 * cout), lambda i: (0, 0)),
            pl.BlockSpec((cout, 1), lambda i: (0, 0)),
        ],
        out_specs=[
            pl.BlockSpec((1, cout, F), lambda i: (i, 0, 0)),
            pl.BlockSpec((1, cout, 1), lambda i: (i, 0, 0)),
            pl.BlockSpec((1, cout, 1), lambda i: (i, 0, 0)),
        ],
        out_shape=[
            jax.ShapeDtypeStruct((B, cout, F), jnp.float32),
            jax.ShapeDtypeStruct((B, cout, 1), jnp.float32),
            jax.ShapeDtypeStruct((B, cout, 1), jnp.float32),
        ],
        compiler_params=_parallel(),
    )(h1, sc1, sh1, prep["w2s"], prep["b2"])

    sc2, sh2 = _bn_affine_from_sums(s2, q2, prep["bn2_g"], prep["bn2_b"], B * F)

    # FrequencyAwareAttention: pooled mean of BN2(h2) = mean(h2)*scale + shift
    # (from the in-kernel sums — no re-read of h2).  The MLP is sub-vreg sized,
    # so it stays in plain JAX.
    y = s2[:, :, 0] * (1.0 / F) * sc2[:, 0][None, :] + sh2[:, 0][None, :]
    gate = jax.nn.sigmoid(jax.nn.relu(y @ prep["fc1_w"].T) @ prep["fc2_w"].T)

    # --- Kernel C: BN2 + gate + ReLU ------------------------------------------
    out = pl.pallas_call(
        _bn_attn_relu_kernel,
        grid=(B,),
        in_specs=[
            pl.BlockSpec((1, cout, F), lambda i: (i, 0, 0)),
            pl.BlockSpec((cout, 1), lambda i: (0, 0)),
            pl.BlockSpec((cout, 1), lambda i: (0, 0)),
            pl.BlockSpec((1, cout, 1), lambda i: (i, 0, 0)),
        ],
        out_specs=pl.BlockSpec((1, cout, F), lambda i: (i, 0, 0)),
        out_shape=jax.ShapeDtypeStruct((B, cout, F), jnp.float32),
        compiler_params=_parallel(),
    )(h2, sc2, sh2, gate.reshape(B, cout, 1))
    return out


# ----------------------------------------------------------------------------
# Deterministic parameter init (shapes follow the PyTorch module)
# ----------------------------------------------------------------------------
def init_params(key, in_channels, out_channels):
    ch = in_channels // 2
    hidden = max(out_channels // 8, 8)
    ks = jax.random.split(key, 8)

    def u(k, shape, fan):
        bound = 1.0 / np.sqrt(fan)
        return jax.random.uniform(k, shape, jnp.float32, -bound, bound)

    return {
        "up_w": u(ks[0], (in_channels, ch, 2), in_channels * 2),
        "up_b": u(ks[1], (ch,), in_channels * 2),
        "conv1_w": u(ks[2], (out_channels, in_channels, 3), in_channels * 3),
        "conv1_b": u(ks[3], (out_channels,), in_channels * 3),
        "conv2_w": u(ks[4], (out_channels, out_channels, 3), out_channels * 3),
        "conv2_b": u(ks[5], (out_channels,), out_channels * 3),
        "bn1_g": jnp.ones((out_channels,), jnp.float32),
        "bn1_b": jnp.zeros((out_channels,), jnp.float32),
        "bn2_g": jnp.ones((out_channels,), jnp.float32),
        "bn2_b": jnp.zeros((out_channels,), jnp.float32),
        "fc1_w": u(ks[6], (hidden, out_channels), out_channels),
        "fc2_w": u(ks[7], (out_channels, hidden), hidden),
    }


# ----------------------------------------------------------------------------
# Pure-JAX reference (correctness cross-check)
# ----------------------------------------------------------------------------
def ref_forward(params, x1, x2):
    B = x1.shape[0]
    W = params["up_w"]                                          # (Cin, Ch, 2)
    yk = jnp.einsum("bil,iok->bolk", x1, W)                     # (B, Ch, L1, 2)
    x1u = yk.reshape(B, W.shape[1], -1) + params["up_b"][None, :, None]
    diff = x2.shape[2] - x1u.shape[2]
    if diff > 0:
        x1u = jnp.pad(x1u, ((0, 0), (0, 0), (diff // 2, diff - diff // 2)))
    x = jnp.concatenate([x2, x1u], axis=1)

    def conv(x, w, b):
        return jax.lax.conv_general_dilated(
            x, w, (1,), [(1, 1)],
            dimension_numbers=("NCH", "OIH", "NCH")) + b[None, :, None]

    def bn(x, g, bt, eps=1e-5):
        mu = jnp.mean(x, axis=(0, 2), keepdims=True)
        var = jnp.mean((x - mu) ** 2, axis=(0, 2), keepdims=True)
        return (x - mu) / jnp.sqrt(var + eps) * g[None, :, None] + bt[None, :, None]

    h = jax.nn.relu(bn(conv(x, params["conv1_w"], params["conv1_b"]),
                       params["bn1_g"], params["bn1_b"]))
    z = bn(conv(h, params["conv2_w"], params["conv2_b"]),
           params["bn2_g"], params["bn2_b"])
    y = jnp.mean(z, axis=2)
    s = jax.nn.sigmoid(jax.nn.relu(y @ params["fc1_w"].T) @ params["fc2_w"].T)
    return jax.nn.relu(z * s[:, :, None])


if __name__ == "__main__":
    key = jax.random.PRNGKey(0)
    in_channels, out_channels = 16, 16
    B, L1, F2 = 2, 62, 128          # up(x1) -> length 124, padded (2, 2) to 128
    k1, k2, kp = jax.random.split(key, 3)
    x1 = jax.random.normal(k1, (B, in_channels, L1), jnp.float32)
    x2 = jax.random.normal(k2, (B, in_channels // 2, F2), jnp.float32)
    params = init_params(kp, in_channels, out_channels)
    prep = prepare_params(params)

    out = up_forward(prep, x1, x2)
    out = jax.block_until_ready(out)

    ref = ref_forward(params, x1, x2)
    np.testing.assert_allclose(np.asarray(out), np.asarray(ref),
                               rtol=1e-4, atol=1e-4)
    print("KERNEL_OK")
</pallas_src>

<mosaic_0001>
module attributes {stable_mosaic.version = 11 : i64} {
  func.func @_up_conv1_kernel(%arg0: i32, %arg1: memref<1x16x62xf32, #tpu.memory_space<vmem>>, %arg2: memref<1x8x128xf32, #tpu.memory_space<vmem>>, %arg3: memref<16x16xf32, #tpu.memory_space<vmem>>, %arg4: memref<16x1xf32, #tpu.memory_space<vmem>>, %arg5: memref<62x128xf32, #tpu.memory_space<vmem>>, %arg6: memref<62x128xf32, #tpu.memory_space<vmem>>, %arg7: memref<16x48xf32, #tpu.memory_space<vmem>>, %arg8: memref<16x1xf32, #tpu.memory_space<vmem>>, %arg9: memref<1x16x128xf32, #tpu.memory_space<vmem>>, %arg10: memref<1x16x1xf32, #tpu.memory_space<vmem>>, %arg11: memref<1x16x1xf32, #tpu.memory_space<vmem>>) attributes {dimension_semantics = [#tpu.dimension_semantics<parallel>], iteration_bounds = array<i64: 2>, scalar_prefetch = 0 : i64, scratch_operands = 0 : i64, tpu.core_type = #tpu.core_type<tc>, window_params = [{transform_indices = @transform_0, window_bounds = array<i64: 1, 16, 62>}, {transform_indices = @transform_1, window_bounds = array<i64: 1, 8, 128>}, {pipeline_mode = #tpu.pipeline_mode<synchronous>, transform_indices = @transform_2, window_bounds = array<i64: 16, 16>}, {pipeline_mode = #tpu.pipeline_mode<synchronous>, transform_indices = @transform_3, window_bounds = array<i64: 16, 1>}, {pipeline_mode = #tpu.pipeline_mode<synchronous>, transform_indices = @transform_4, window_bounds = array<i64: 62, 128>}, {pipeline_mode = #tpu.pipeline_mode<synchronous>, transform_indices = @transform_5, window_bounds = array<i64: 62, 128>}, {pipeline_mode = #tpu.pipeline_mode<synchronous>, transform_indices = @transform_6, window_bounds = array<i64: 16, 48>}, {pipeline_mode = #tpu.pipeline_mode<synchronous>, transform_indices = @transform_7, window_bounds = array<i64: 16, 1>}, {transform_indices = @transform_8, window_bounds = array<i64: 1, 16, 128>}, {transform_indices = @transform_9, window_bounds = array<i64: 1, 16, 1>}, {transform_indices = @transform_10, window_bounds = array<i64: 1, 16, 1>}]} {
    %c0 = arith.constant 0 : index
    %c0_0 = arith.constant 0 : index
    %c0_1 = arith.constant 0 : index
    %0 = vector.load %arg1[%c0, %c0_0, %c0_1] : memref<1x16x62xf32, #tpu.memory_space<vmem>>, vector<1x16x62xf32>
    %1 = vector.shape_cast %0 : vector<1x16x62xf32> to vector<16x62xf32>
    %c0_2 = arith.constant 0 : index
    %c0_3 = arith.constant 0 : index
    %2 = vector.load %arg3[%c0_2, %c0_3] : memref<16x16xf32, #tpu.memory_space<vmem>>, vector<16x16xf32>
    %cst = arith.constant dense<0.000000e+00> : vector<16x62xf32>
    %3 = tpu.matmul %2, %1, %cst {dimension_numbers = #tpu.dot_dimension_numbers<[1], [0], [0], [1], [0, 0, 1, 1], [], []>} : vector<16x16xf32>, vector<16x62xf32>, vector<16x62xf32> -> vector<16x62xf32>
    %c0_4 = arith.constant 0 : index
    %c0_5 = arith.constant 0 : index
    %4 = vector.load %arg4[%c0_4, %c0_5] : memref<16x1xf32, #tpu.memory_space<vmem>>, vector<16x1xf32>
    %5 = vector.broadcast %4 : vector<16x1xf32> to vector<16x62xf32>
    %6 = arith.addf %3, %5 : vector<16x62xf32>
    %7 = vector.extract_strided_slice %6 {offsets = [0, 0], sizes = [8, 62], strides = [1, 1]} : vector<16x62xf32> to vector<8x62xf32>
    %c0_6 = arith.constant 0 : index
    %c0_7 = arith.constant 0 : index
    %8 = vector.load %arg5[%c0_6, %c0_7] : memref<62x128xf32, #tpu.memory_space<vmem>>, vector<62x128xf32>
    %cst_8 = arith.constant dense<0.000000e+00> : vector<8x128xf32>
    %9 = tpu.matmul %7, %8, %cst_8 {dimension_numbers = #tpu.dot_dimension_numbers<[1], [0], [0], [1], [0, 0, 1, 1], [], []>} : vector<8x62xf32>, vector<62x128xf32>, vector<8x128xf32> -> vector<8x128xf32>
    %10 = vector.extract_strided_slice %6 {offsets = [8, 0], sizes = [8, 62], strides = [1, 1]} : vector<16x62xf32> to vector<8x62xf32>
    %c0_9 = arith.constant 0 : index
    %c0_10 = arith.constant 0 : index
    %11 = vector.load %arg6[%c0_9, %c0_10] : memref<62x128xf32, #tpu.memory_space<vmem>>, vector<62x128xf32>
    %cst_11 = arith.constant dense<0.000000e+00> : vector<8x128xf32>
    %12 = tpu.matmul %10, %11, %cst_11 {dimension_numbers = #tpu.dot_dimension_numbers<[1], [0], [0], [1], [0, 0, 1, 1], [], []>} : vector<8x62xf32>, vector<62x128xf32>, vector<8x128xf32> -> vector<8x128xf32>
    %13 = arith.addf %9, %12 : vector<8x128xf32>
    %c0_12 = arith.constant 0 : index
    %c0_13 = arith.constant 0 : index
    %c0_14 = arith.constant 0 : index
    %14 = vector.load %arg2[%c0_12, %c0_13, %c0_14] : memref<1x8x128xf32, #tpu.memory_space<vmem>>, vector<1x8x128xf32>
    %15 = vector.shape_cast %14 : vector<1x8x128xf32> to vector<8x128xf32>
    %16 = tpu.iota {dimensions = array<i32: 1>} : vector<8x128xi32>
    %c0_i32 = arith.constant 0 : i32
    %17 = vector.broadcast %c0_i32 : i32 to vector<8x128xi32>
    %18 = arith.cmpi eq, %16, %17 : vector<8x128xi32>
    %c1_i32 = arith.constant 1 : i32
    %19 = tpu.dynamic_rotate %15 by %c1_i32 dim 1 : vector<8x128xf32>, i32 -> vector<8x128xf32>
    %cst_15 = arith.constant 0.000000e+00 : f32
    %20 = vector.broadcast %cst_15 : f32 to vector<8x128xf32>
    %21 = arith.select %18, %20, %19 : vector<8x128xi1>, vector<8x128xf32>
    %22 = tpu.iota {dimensions = array<i32: 1>} : vector<8x128xi32>
    %c127_i32 = arith.constant 127 : i32
    %23 = vector.broadcast %c127_i32 : i32 to vector<8x128xi32>
    %24 = arith.cmpi eq, %22, %23 : vector<8x128xi32>
    %c127_i32_16 = arith.constant 127 : i32
    %25 = tpu.dynamic_rotate %15 by %c127_i32_16 dim 1 : vector<8x128xf32>, i32 -> vector<8x128xf32>
    %cst_17 = arith.constant 0.000000e+00 : f32
    %26 = vector.broadcast %cst_17 : f32 to vector<8x128xf32>
    %27 = arith.select %24, %26, %25 : vector<8x128xi1>, vector<8x128xf32>
    %28 = tpu.iota {dimensions = array<i32: 1>} : vector<8x128xi32>
    %c0_i32_18 = arith.constant 0 : i32
    %29 = vector.broadcast %c0_i32_18 : i32 to vector<8x128xi32>
    %30 = arith.cmpi eq, %28, %29 : vector<8x128xi32>
    %c1_i32_19 = arith.constant 1 : i32
    %31 = tpu.dynamic_rotate %13 by %c1_i32_19 dim 1 : vector<8x128xf32>, i32 -> vector<8x128xf32>
    %cst_20 = arith.constant 0.000000e+00 : f32
    %32 = vector.broadcast %cst_20 : f32 to vector<8x128xf32>
    %33 = arith.select %30, %32, %31 : vector<8x128xi1>, vector<8x128xf32>
    %34 = tpu.iota {dimensions = array<i32: 1>} : vector<8x128xi32>
    %c127_i32_21 = arith.constant 127 : i32
    %35 = vector.broadcast %c127_i32_21 : i32 to vector<8x128xi32>
    %36 = arith.cmpi eq, %34, %35 : vector<8x128xi32>
    %c127_i32_22 = arith.constant 127 : i32
    %37 = tpu.dynamic_rotate %13 by %c127_i32_22 dim 1 : vector<8x128xf32>, i32 -> vector<8x128xf32>
    %cst_23 = arith.constant 0.000000e+00 : f32
    %38 = vector.broadcast %cst_23 : f32 to vector<8x128xf32>
    %39 = arith.select %36, %38, %37 : vector<8x128xi1>, vector<8x128xf32>
    %40 = tpu.concatenate %21, %15, %27, %33, %13, %39 in 0 : vector<8x128xf32>, vector<8x128xf32>, vector<8x128xf32>, vector<8x128xf32>, vector<8x128xf32>, vector<8x128xf32> -> vector<48x128xf32>
    %c0_24 = arith.constant 0 : index
    %c0_25 = arith.constant 0 : index
    %41 = vector.load %arg7[%c0_24, %c0_25] : memref<16x48xf32, #tpu.memory_space<vmem>>, vector<16x48xf32>
    %cst_26 = arith.constant dense<0.000000e+00> : vector<16x128xf32>
    %42 = tpu.matmul %41, %40, %cst_26 {dimension_numbers = #tpu.dot_dimension_numbers<[1], [0], [0], [1], [0, 0, 1, 1], [], []>} : vector<16x48xf32>, vector<48x128xf32>, vector<16x128xf32> -> vector<16x128xf32>
    %c0_27 = arith.constant 0 : index
    %c0_28 = arith.constant 0 : index
    %43 = vector.load %arg8[%c0_27, %c0_28] : memref<16x1xf32, #tpu.memory_space<vmem>>, vector<16x1xf32>
    %44 = vector.broadcast %43 : vector<16x1xf32> to vector<16x128xf32>
    %45 = arith.addf %42, %44 : vector<16x128xf32>
    %c0_29 = arith.constant 0 : index
    %c0_30 = arith.constant 0 : index
    %c0_31 = arith.constant 0 : index
    %46 = vector.load %arg9[%c0_29, %c0_30, %c0_31] : memref<1x16x128xf32, #tpu.memory_space<vmem>>, vector<1x16x128xf32>
    %47 = vector.shape_cast %46 : vector<1x16x128xf32> to vector<16x128xf32>
    %48 = vector.shape_cast %45 : vector<16x128xf32> to vector<1x16x128xf32>
    tpu.vector_store %arg9[%c0_29, %c0_30, %c0_31], %48 {strides = array<i32>} : memref<1x16x128xf32, #tpu.memory_space<vmem>>, vector<1x16x128xf32>,
    %cst_32 = arith.constant dense<0.000000e+00> : vector<16xf32>
    %49 = vector.multi_reduction <add>, %45, %cst_32 [1] : vector<16x128xf32> to vector<16xf32>
    %50 = vector.shape_cast %49 : vector<16xf32> to vector<16x1xf32>
    %c0_33 = arith.constant 0 : index
    %c0_34 = arith.constant 0 : index
    %c0_35 = arith.constant 0 : index
    %51 = vector.load %arg10[%c0_33, %c0_34, %c0_35] : memref<1x16x1xf32, #tpu.memory_space<vmem>>, vector<1x16x1xf32>
    %52 = vector.shape_cast %51 : vector<1x16x1xf32> to vector<16x1xf32>
    %53 = vector.shape_cast %50 : vector<16x1xf32> to vector<1x16x1xf32>
    tpu.vector_store %arg10[%c0_33, %c0_34, %c0_35], %53 {strides = array<i32>} : memref<1x16x1xf32, #tpu.memory_space<vmem>>, vector<1x16x1xf32>,
    %54 = arith.mulf %45, %45 : vector<16x128xf32>
    %cst_36 = arith.constant dense<0.000000e+00> : vector<16xf32>
    %55 = vector.multi_reduction <add>, %54, %cst_36 [1] : vector<16x128xf32> to vector<16xf32>
    %56 = vector.shape_cast %55 : vector<16xf32> to vector<16x1xf32>
    %c0_37 = arith.constant 0 : index
    %c0_38 = arith.constant 0 : index
    %c0_39 = arith.constant 0 : index
    %57 = vector.load %arg11[%c0_37, %c0_38, %c0_39] : memref<1x16x1xf32, #tpu.memory_space<vmem>>, vector<1x16x1xf32>
    %58 = vector.shape_cast %57 : vector<1x16x1xf32> to vector<16x1xf32>
    %59 = vector.shape_cast %56 : vector<16x1xf32> to vector<1x16x1xf32>
    tpu.vector_store %arg11[%c0_37, %c0_38, %c0_39], %59 {strides = array<i32>} : memref<1x16x1xf32, #tpu.memory_space<vmem>>, vector<1x16x1xf32>,
    return
  }
  func.func @transform_0(%arg0: i32) -> (i32, i32, i32) {
    %c0_i32 = arith.constant 0 : i32
    %c0_i32_0 = arith.constant 0 : i32
    %c0_i32_1 = arith.constant 0 : i32
    return %arg0, %c0_i32, %c0_i32_0 : i32, i32, i32
  }
  func.func @transform_1(%arg0: i32) -> (i32, i32, i32) {
    %c0_i32 = arith.constant 0 : i32
    %c0_i32_0 = arith.constant 0 : i32
    %c0_i32_1 = arith.constant 0 : i32
    return %arg0, %c0_i32, %c0_i32_0 : i32, i32, i32
  }
  func.func @transform_2(%arg0: i32) -> (i32, i32) {
    %c0_i32 = arith.constant 0 : i32
    %c0_i32_0 = arith.constant 0 : i32
    %c0_i32_1 = arith.constant 0 : i32
    return %c0_i32, %c0_i32_0 : i32, i32
  }
  func.func @transform_3(%arg0: i32) -> (i32, i32) {
    %c0_i32 = arith.constant 0 : i32
    %c0_i32_0 = arith.constant 0 : i32
    %c0_i32_1 = arith.constant 0 : i32
    return %c0_i32, %c0_i32_0 : i32, i32
  }
  func.func @transform_4(%arg0: i32) -> (i32, i32) {
    %c0_i32 = arith.constant 0 : i32
    %c0_i32_0 = arith.constant 0 : i32
    %c0_i32_1 = arith.constant 0 : i32
    return %c0_i32, %c0_i32_0 : i32, i32
  }
  func.func @transform_5(%arg0: i32) -> (i32, i32) {
    %c0_i32 = arith.constant 0 : i32
    %c0_i32_0 = arith.constant 0 : i32
    %c0_i32_1 = arith.constant 0 : i32
    return %c0_i32, %c0_i32_0 : i32, i32
  }
  func.func @transform_6(%arg0: i32) -> (i32, i32) {
    %c0_i32 = arith.constant 0 : i32
    %c0_i32_0 = arith.constant 0 : i32
    %c0_i32_1 = arith.constant 0 : i32
    return %c0_i32, %c0_i32_0 : i32, i32
  }
  func.func @transform_7(%arg0: i32) -> (i32, i32) {
    %c0_i32 = arith.constant 0 : i32
    %c0_i32_0 = arith.constant 0 : i32
    %c0_i32_1 = arith.constant 0 : i32
    return %c0_i32, %c0_i32_0 : i32, i32
  }
  func.func @transform_8(%arg0: i32) -> (i32, i32, i32) {
    %c0_i32 = arith.constant 0 : i32
    %c0_i32_0 = arith.constant 0 : i32
    %c0_i32_1 = arith.constant 0 : i32
    return %arg0, %c0_i32, %c0_i32_0 : i32, i32, i32
  }
  func.func @transform_9(%arg0: i32) -> (i32, i32, i32) {
    %c0_i32 = arith.constant 0 : i32
    %c0_i32_0 = arith.constant 0 : i32
    %c0_i32_1 = arith.constant 0 : i32
    return %arg0, %c0_i32, %c0_i32_0 : i32, i32, i32
  }
  func.func @transform_10(%arg0: i32) -> (i32, i32, i32) {
    %c0_i32 = arith.constant 0 : i32
    %c0_i32_0 = arith.constant 0 : i32
    %c0_i32_1 = arith.constant 0 : i32
    return %arg0, %c0_i32, %c0_i32_0 : i32, i32, i32
  }
}

module attributes {stable_mosaic.version = 11 : i64} {
  func.func @_bnrelu_conv2_kernel(%arg0: i32, %arg1: memref<1x16x128xf32, #tpu.memory_space<vmem>>, %arg2: memref<16x1xf32, #tpu.memory_space<vmem>>, %arg3: memref<16x1xf32, #tpu.memory_space<vmem>>, %arg4: memref<16x48xf32, #tpu.memory_space<vmem>>, %arg5: memref<16x1xf32, #tpu.memory_space<vmem>>, %arg6: memref<1x16x128xf32, #tpu.memory_space<vmem>>, %arg7: memref<1x16x1xf32, #tpu.memory_space<vmem>>, %arg8: memref<1x16x1xf32, #tpu.memory_space<vmem>>) attributes {dimension_semantics = [#tpu.dimension_semantics<parallel>], iteration_bounds = array<i64: 2>, scalar_prefetch = 0 : i64, scratch_operands = 0 : i64, tpu.core_type = #tpu.core_type<tc>, window_params = [{transform_indices = @transform_0, window_bounds = array<i64: 1, 16, 128>}, {pipeline_mode = #tpu.pipeline_mode<synchronous>, transform_indices = @transform_1, window_bounds = array<i64: 16, 1>}, {pipeline_mode = #tpu.pipeline_mode<synchronous>, transform_indices = @transform_2, window_bounds = array<i64: 16, 1>}, {pipeline_mode = #tpu.pipeline_mode<synchronous>, transform_indices = @transform_3, window_bounds = array<i64: 16, 48>}, {pipeline_mode = #tpu.pipeline_mode<synchronous>, transform_indices = @transform_4, window_bounds = array<i64: 16, 1>}, {transform_indices = @transform_5, window_bounds = array<i64: 1, 16, 128>}, {transform_indices = @transform_6, window_bounds = array<i64: 1, 16, 1>}, {transform_indices = @transform_7, window_bounds = array<i64: 1, 16, 1>}]} {
    %c0 = arith.constant 0 : index
    %c0_0 = arith.constant 0 : index
    %c0_1 = arith.constant 0 : index
    %0 = vector.load %arg1[%c0, %c0_0, %c0_1] : memref<1x16x128xf32, #tpu.memory_space<vmem>>, vector<1x16x128xf32>
    %1 = vector.shape_cast %0 : vector<1x16x128xf32> to vector<16x128xf32>
    %c0_2 = arith.constant 0 : index
    %c0_3 = arith.constant 0 : index
    %2 = vector.load %arg2[%c0_2, %c0_3] : memref<16x1xf32, #tpu.memory_space<vmem>>, vector<16x1xf32>
    %3 = vector.broadcast %2 : vector<16x1xf32> to vector<16x128xf32>
    %4 = arith.mulf %1, %3 : vector<16x128xf32>
    %c0_4 = arith.constant 0 : index
    %c0_5 = arith.constant 0 : index
    %5 = vector.load %arg3[%c0_4, %c0_5] : memref<16x1xf32, #tpu.memory_space<vmem>>, vector<16x1xf32>
    %6 = vector.broadcast %5 : vector<16x1xf32> to vector<16x128xf32>
    %7 = arith.addf %4, %6 : vector<16x128xf32>
    %cst = arith.constant 0.000000e+00 : f32
    %8 = vector.broadcast %cst : f32 to vector<16x128xf32>
    %9 = arith.maximumf %7, %8 : vector<16x128xf32>
    %10 = tpu.iota {dimensions = array<i32: 1>} : vector<16x128xi32>
    %c0_i32 = arith.constant 0 : i32
    %11 = vector.broadcast %c0_i32 : i32 to vector<16x128xi32>
    %12 = arith.cmpi eq, %10, %11 : vector<16x128xi32>
    %c1_i32 = arith.constant 1 : i32
    %13 = tpu.dynamic_rotate %9 by %c1_i32 dim 1 : vector<16x128xf32>, i32 -> vector<16x128xf32>
    %cst_6 = arith.constant 0.000000e+00 : f32
    %14 = vector.broadcast %cst_6 : f32 to vector<16x128xf32>
    %15 = arith.select %12, %14, %13 : vector<16x128xi1>, vector<16x128xf32>
    %16 = tpu.iota {dimensions = array<i32: 1>} : vector<16x128xi32>
    %c127_i32 = arith.constant 127 : i32
    %17 = vector.broadcast %c127_i32 : i32 to vector<16x128xi32>
    %18 = arith.cmpi eq, %16, %17 : vector<16x128xi32>
    %c127_i32_7 = arith.constant 127 : i32
    %19 = tpu.dynamic_rotate %9 by %c127_i32_7 dim 1 : vector<16x128xf32>, i32 -> vector<16x128xf32>
    %cst_8 = arith.constant 0.000000e+00 : f32
    %20 = vector.broadcast %cst_8 : f32 to vector<16x128xf32>
    %21 = arith.select %18, %20, %19 : vector<16x128xi1>, vector<16x128xf32>
    %22 = tpu.concatenate %15, %9, %21 in 0 : vector<16x128xf32>, vector<16x128xf32>, vector<16x128xf32> -> vector<48x128xf32>
    %c0_9 = arith.constant 0 : index
    %c0_10 = arith.constant 0 : index
    %23 = vector.load %arg4[%c0_9, %c0_10] : memref<16x48xf32, #tpu.memory_space<vmem>>, vector<16x48xf32>
    %cst_11 = arith.constant dense<0.000000e+00> : vector<16x128xf32>
    %24 = tpu.matmul %23, %22, %cst_11 {dimension_numbers = #tpu.dot_dimension_numbers<[1], [0], [0], [1], [0, 0, 1, 1], [], []>} : vector<16x48xf32>, vector<48x128xf32>, vector<16x128xf32> -> vector<16x128xf32>
    %c0_12 = arith.constant 0 : index
    %c0_13 = arith.constant 0 : index
    %25 = vector.load %arg5[%c0_12, %c0_13] : memref<16x1xf32, #tpu.memory_space<vmem>>, vector<16x1xf32>
    %26 = vector.broadcast %25 : vector<16x1xf32> to vector<16x128xf32>
    %27 = arith.addf %24, %26 : vector<16x128xf32>
    %c0_14 = arith.constant 0 : index
    %c0_15 = arith.constant 0 : index
    %c0_16 = arith.constant 0 : index
    %28 = vector.load %arg6[%c0_14, %c0_15, %c0_16] : memref<1x16x128xf32, #tpu.memory_space<vmem>>, vector<1x16x128xf32>
    %29 = vector.shape_cast %28 : vector<1x16x128xf32> to vector<16x128xf32>
    %30 = vector.shape_cast %27 : vector<16x128xf32> to vector<1x16x128xf32>
    tpu.vector_store %arg6[%c0_14, %c0_15, %c0_16], %30 {strides = array<i32>} : memref<1x16x128xf32, #tpu.memory_space<vmem>>, vector<1x16x128xf32>,
    %cst_17 = arith.constant dense<0.000000e+00> : vector<16xf32>
    %31 = vector.multi_reduction <add>, %27, %cst_17 [1] : vector<16x128xf32> to vector<16xf32>
    %32 = vector.shape_cast %31 : vector<16xf32> to vector<16x1xf32>
    %c0_18 = arith.constant 0 : index
    %c0_19 = arith.constant 0 : index
    %c0_20 = arith.constant 0 : index
    %33 = vector.load %arg7[%c0_18, %c0_19, %c0_20] : memref<1x16x1xf32, #tpu.memory_space<vmem>>, vector<1x16x1xf32>
    %34 = vector.shape_cast %33 : vector<1x16x1xf32> to vector<16x1xf32>
    %35 = vector.shape_cast %32 : vector<16x1xf32> to vector<1x16x1xf32>
    tpu.vector_store %arg7[%c0_18, %c0_19, %c0_20], %35 {strides = array<i32>} : memref<1x16x1xf32, #tpu.memory_space<vmem>>, vector<1x16x1xf32>,
    %36 = arith.mulf %27, %27 : vector<16x128xf32>
    %cst_21 = arith.constant dense<0.000000e+00> : vector<16xf32>
    %37 = vector.multi_reduction <add>, %36, %cst_21 [1] : vector<16x128xf32> to vector<16xf32>
    %38 = vector.shape_cast %37 : vector<16xf32> to vector<16x1xf32>
    %c0_22 = arith.constant 0 : index
    %c0_23 = arith.constant 0 : index
    %c0_24 = arith.constant 0 : index
    %39 = vector.load %arg8[%c0_22, %c0_23, %c0_24] : memref<1x16x1xf32, #tpu.memory_space<vmem>>, vector<1x16x1xf32>
    %40 = vector.shape_cast %39 : vector<1x16x1xf32> to vector<16x1xf32>
    %41 = vector.shape_cast %38 : vector<16x1xf32> to vector<1x16x1xf32>
    tpu.vector_store %arg8[%c0_22, %c0_23, %c0_24], %41 {strides = array<i32>} : memref<1x16x1xf32, #tpu.memory_space<vmem>>, vector<1x16x1xf32>,
    return
  }
  func.func @transform_0(%arg0: i32) -> (i32, i32, i32) {
    %c0_i32 = arith.constant 0 : i32
    %c0_i32_0 = arith.constant 0 : i32
    %c0_i32_1 = arith.constant 0 : i32
    return %arg0, %c0_i32, %c0_i32_0 : i32, i32, i32
  }
  func.func @transform_1(%arg0: i32) -> (i32, i32) {
    %c0_i32 = arith.constant 0 : i32
    %c0_i32_0 = arith.constant 0 : i32
    %c0_i32_1 = arith.constant 0 : i32
    return %c0_i32, %c0_i32_0 : i32, i32
  }
  func.func @transform_2(%arg0: i32) -> (i32, i32) {
    %c0_i32 = arith.constant 0 : i32
    %c0_i32_0 = arith.constant 0 : i32
    %c0_i32_1 = arith.constant 0 : i32
    return %c0_i32, %c0_i32_0 : i32, i32
  }
  func.func @transform_3(%arg0: i32) -> (i32, i32) {
    %c0_i32 = arith.constant 0 : i32
    %c0_i32_0 = arith.constant 0 : i32
    %c0_i32_1 = arith.constant 0 : i32
    return %c0_i32, %c0_i32_0 : i32, i32
  }
  func.func @transform_4(%arg0: i32) -> (i32, i32) {
    %c0_i32 = arith.constant 0 : i32
    %c0_i32_0 = arith.constant 0 : i32
    %c0_i32_1 = arith.constant 0 : i32
    return %c0_i32, %c0_i32_0 : i32, i32
  }
  func.func @transform_5(%arg0: i32) -> (i32, i32, i32) {
    %c0_i32 = arith.constant 0 : i32
    %c0_i32_0 = arith.constant 0 : i32
    %c0_i32_1 = arith.constant 0 : i32
    return %arg0, %c0_i32, %c0_i32_0 : i32, i32, i32
  }
  func.func @transform_6(%arg0: i32) -> (i32, i32, i32) {
    %c0_i32 = arith.constant 0 : i32
    %c0_i32_0 = arith.constant 0 : i32
    %c0_i32_1 = arith.constant 0 : i32
    return %arg0, %c0_i32, %c0_i32_0 : i32, i32, i32
  }
  func.func @transform_7(%arg0: i32) -> (i32, i32, i32) {
    %c0_i32 = arith.constant 0 : i32
    %c0_i32_0 = arith.constant 0 : i32
    %c0_i32_1 = arith.constant 0 : i32
    return %arg0, %c0_i32, %c0_i32_0 : i32, i32, i32
  }
}

module attributes {stable_mosaic.version = 11 : i64} {
  func.func @_bn_attn_relu_kernel(%arg0: i32, %arg1: memref<1x16x128xf32, #tpu.memory_space<vmem>>, %arg2: memref<16x1xf32, #tpu.memory_space<vmem>>, %arg3: memref<16x1xf32, #tpu.memory_space<vmem>>, %arg4: memref<1x16x1xf32, #tpu.memory_space<vmem>>, %arg5: memref<1x16x128xf32, #tpu.memory_space<vmem>>) attributes {dimension_semantics = [#tpu.dimension_semantics<parallel>], iteration_bounds = array<i64: 2>, scalar_prefetch = 0 : i64, scratch_operands = 0 : i64, tpu.core_type = #tpu.core_type<tc>, window_params = [{transform_indices = @transform_0, window_bounds = array<i64: 1, 16, 128>}, {pipeline_mode = #tpu.pipeline_mode<synchronous>, transform_indices = @transform_1, window_bounds = array<i64: 16, 1>}, {pipeline_mode = #tpu.pipeline_mode<synchronous>, transform_indices = @transform_2, window_bounds = array<i64: 16, 1>}, {transform_indices = @transform_3, window_bounds = array<i64: 1, 16, 1>}, {transform_indices = @transform_4, window_bounds = array<i64: 1, 16, 128>}]} {
    %c0 = arith.constant 0 : index
    %c0_0 = arith.constant 0 : index
    %c0_1 = arith.constant 0 : index
    %0 = vector.load %arg1[%c0, %c0_0, %c0_1] : memref<1x16x128xf32, #tpu.memory_space<vmem>>, vector<1x16x128xf32>
    %1 = vector.shape_cast %0 : vector<1x16x128xf32> to vector<16x128xf32>
    %c0_2 = arith.constant 0 : index
    %c0_3 = arith.constant 0 : index
    %2 = vector.load %arg2[%c0_2, %c0_3] : memref<16x1xf32, #tpu.memory_space<vmem>>, vector<16x1xf32>
    %3 = vector.broadcast %2 : vector<16x1xf32> to vector<16x128xf32>
    %4 = arith.mulf %1, %3 : vector<16x128xf32>
    %c0_4 = arith.constant 0 : index
    %c0_5 = arith.constant 0 : index
    %5 = vector.load %arg3[%c0_4, %c0_5] : memref<16x1xf32, #tpu.memory_space<vmem>>, vector<16x1xf32>
    %6 = vector.broadcast %5 : vector<16x1xf32> to vector<16x128xf32>
    %7 = arith.addf %4, %6 : vector<16x128xf32>
    %c0_6 = arith.constant 0 : index
    %c0_7 = arith.constant 0 : index
    %c0_8 = arith.constant 0 : index
    %8 = vector.load %arg4[%c0_6, %c0_7, %c0_8] : memref<1x16x1xf32, #tpu.memory_space<vmem>>, vector<1x16x1xf32>
    %9 = vector.shape_cast %8 : vector<1x16x1xf32> to vector<16x1xf32>
    %10 = vector.broadcast %9 : vector<16x1xf32> to vector<16x128xf32>
    %11 = arith.mulf %7, %10 : vector<16x128xf32>
    %cst = arith.constant 0.000000e+00 : f32
    %12 = vector.broadcast %cst : f32 to vector<16x128xf32>
    %13 = arith.maximumf %11, %12 : vector<16x128xf32>
    %c0_9 = arith.constant 0 : index
    %c0_10 = arith.constant 0 : index
    %c0_11 = arith.constant 0 : index
    %14 = vector.load %arg5[%c0_9, %c0_10, %c0_11] : memref<1x16x128xf32, #tpu.memory_space<vmem>>, vector<1x16x128xf32>
    %15 = vector.shape_cast %14 : vector<1x16x128xf32> to vector<16x128xf32>
    %16 = vector.shape_cast %13 : vector<16x128xf32> to vector<1x16x128xf32>
    tpu.vector_store %arg5[%c0_9, %c0_10, %c0_11], %16 {strides = array<i32>} : memref<1x16x128xf32, #tpu.memory_space<vmem>>, vector<1x16x128xf32>,
    return
  }
  func.func @transform_0(%arg0: i32) -> (i32, i32, i32) {
    %c0_i32 = arith.constant 0 : i32
    %c0_i32_0 = arith.constant 0 : i32
    %c0_i32_1 = arith.constant 0 : i32
    return %arg0, %c0_i32, %c0_i32_0 : i32, i32, i32
  }
  func.func @transform_1(%arg0: i32) -> (i32, i32) {
    %c0_i32 = arith.constant 0 : i32
    %c0_i32_0 = arith.constant 0 : i32
    %c0_i32_1 = arith.constant 0 : i32
    return %c0_i32, %c0_i32_0 : i32, i32
  }
  func.func @transform_2(%arg0: i32) -> (i32, i32) {
    %c0_i32 = arith.constant 0 : i32
    %c0_i32_0 = arith.constant 0 : i32
    %c0_i32_1 = arith.constant 0 : i32
    return %c0_i32, %c0_i32_0 : i32, i32
  }
  func.func @transform_3(%arg0: i32) -> (i32, i32, i32) {
    %c0_i32 = arith.constant 0 : i32
    %c0_i32_0 = arith.constant 0 : i32
    %c0_i32_1 = arith.constant 0 : i32
    return %arg0, %c0_i32, %c0_i32_0 : i32, i32, i32
  }
  func.func @transform_4(%arg0: i32) -> (i32, i32, i32) {
    %c0_i32 = arith.constant 0 : i32
    %c0_i32_0 = arith.constant 0 : i32
    %c0_i32_1 = arith.constant 0 : i32
    return %arg0, %c0_i32, %c0_i32_0 : i32, i32, i32
  }
}

</mosaic_0001>

<bundles_post_ra>
// kernel: up_forward.3
= control target key start
LH: loop header
LB: loop body
LE: loop exit
PB: predicated region body
PF: predicated region fallthrough
CT: control target
= control target key end

     0   :  { %16 = vsyncpa [#allocation3], 0  ;;  %s1242_s0 = inlined_call_operand.vmem [shape: f32[2,16,62], index: 0, kind: input, shape index: {}]   ;;  %s1243_s1 = inlined_call_operand.vmem [shape: f32[2,8,128], index: 1, kind: input, shape index: {}]   ;;  %s1244_s2 = inlined_call_operand.hbm [shape: f32[16,16], index: 2, kind: input, shape index: {}]   ;;  %s1245_s3 = inlined_call_operand.vmem [shape: f32[16,1], index: 3, kind: input, shape index: {}]   ;;  %s1246_s4 = inlined_call_operand.hbm [shape: f32[62,128], index: 4, kind: input, shape index: {}]   ;;  %s1247_s5 = inlined_call_operand.hbm [shape: f32[62,128], index: 5, kind: input, shape index: {}]   ;;  %s1248_s6 = inlined_call_operand.hbm [shape: f32[16,48], index: 6, kind: input, shape index: {}]   ;;  %s1249_s7 = inlined_call_operand.vmem [shape: f32[16,1], index: 7, kind: input, shape index: {}]   ;;  %s1250_s8 = inlined_call_operand.vmem [shape: f32[2,16,128], index: 8, kind: output, shape index: {0}]   ;;  %s1251_s9 = inlined_call_operand.vmem [shape: f32[2,16,1], index: 9, kind: output, shape index: {1}]   ;;  %s1252_s10 = inlined_call_operand.vmem [shape: f32[2,16,1], index: 10, kind: output, shape index: {2}]  }
   0x1   :  { %17 = vsyncpa [#allocation5], 0 }
   0x2   :  { %18 = vsyncpa [#allocation8], 0  ;;  %s1143_s13 = smov 0  }
   0x3 LB: > { %s1149_s14 = sadd.s32 4294967295, %s1077_s13   ;;  %p839_p0 = scmp.ge.s32.totalorder %s1077_s13, 1  ;;  %s1077_s13 = sphi %s1143_s13, %s24_s13  }
   0x4   : > { %p285_p1 = scmp.lt.s32.totalorder %s1077_s13, 3  ;;  %p912_p2 = scmp.eq.s32.totalorder %s1149_s14, 0 }
   0x5   : > { %s313_s17 = sshll.u32 %s1246_s4, 4  ;;  %s296_s21 = sshll.u32 %s1244_s2, 4  ;;  %s314_s17 = int_to_ptr.hbm [resolvable:$true] %s313_s17  ;;  %s297_s21 = int_to_ptr.hbm [resolvable:$true] %s296_s21 }
   0x6   : > { %p1157_p3 = pnand %p839_p0, %p285_p1  ;;  %s1079_s22 = smov [#allocation4]  }
   0x7   : > { %s315_s23 = sshll.u32 %s1079_s22, 4  ;;  %s1080_s25 = smov [#allocation2]   ;;  %s316_s23 = int_to_ptr.vmem [resolvable:$true] %s315_s23 }
   0x8   : > { %p899_p4 = pneg %p1157_p3  ;;  %s298_s26 = sshll.u32 %s1080_s25, 4  ;;  %s299_s26 = int_to_ptr.vmem [resolvable:$true] %s298_s26 }
   0x9   : > { %s327_s29 = sshll.u32 %s1247_s5, 4  ;;  %s1081_s30 = smov 128   ;;  %s328_s29 = int_to_ptr.hbm [resolvable:$true] %s327_s29 }
   0xa   : > { %p1168_p5 = pnand %p912_p2, %p899_p4  ;;  %s1082_s11 = smov 8  }
   0xb   : > { %s1083_s12 = smov [#allocation6]   ;;  %s341_s20 = sshll.u32 %s1248_s6, 4  ;;  %s342_s20 = int_to_ptr.hbm [resolvable:$true] %s341_s20 }
   0xc   : > { %905 = dma.hbm_to_vmem [thread:$0]  (!%p1168_p5), %s314_s17, 1024, %s316_s23, [#allocation5], %s1081_s30, %s1081_s30, %s1082_s11  }
   0xd   : > { %902 = dma.hbm_to_vmem [thread:$0]  (!%p1168_p5), %s297_s21, 256, %s299_s26, [#allocation3], %s1081_s30, %s1081_s30, %s1082_s11  }
   0xe   : > { %s329_s15 = sshll.u32 %s1083_s12, 4  ;;  %s1084_s22 = smov [#allocation7]   ;;  %s330_s15 = int_to_ptr.vmem [resolvable:$true] %s329_s15 }
   0xf   : > { %908 = dma.hbm_to_vmem [thread:$0]  (!%p1168_p5), %s328_s29, 1024, %s330_s15, [#allocation5], %s1081_s30, %s1081_s30, %s1082_s11  }
  0x10   : > { %s343_s25 = sshll.u32 %s1084_s22, 4  ;;  %377 = sbr.rel (%p1157_p3) target bundleno = 690 (0x2b2), region = 52  ;;  %s344_s25 = int_to_ptr.vmem [resolvable:$true] %s343_s25 }
  0x11   : > { %911 = dma.hbm_to_vmem [thread:$0]  (!%p1168_p5), %s342_s20, 256, %s344_s25, [#allocation8], %s1081_s30, %s1081_s30, %s1082_s11  }
  0x15   : > { %1064 = dma.done.wait (%p912_p2), [#allocation3], 256  }
  0x16   : > { %1066 = vsyncadd (%p912_p2), [#allocation3], 4294967040 }
  0x17   : > { %1068 = dma.done.wait (%p912_p2), [#allocation5], 2048  }
  0x18   : > { %1070 = vsyncadd (%p912_p2), [#allocation5], 4294965248 }
  0x19   : > { %1072 = dma.done.wait (%p912_p2), [#allocation8], 256  }
  0x1a   : > { %1074 = vsyncadd (%p912_p2), [#allocation8], 4294967040  ;;  %p445_p6 = scmp.lt.s32.totalorder %s1149_s14, 1  ;;  %v1085_v0 = vmov 0   ;;  %v473_v1 = vld [vmem:[%s1245_s3] sm:$0xff]  ;;  %vm485_vm0 = vcmask 130048   ;;  %v586_v34 = vlaneseq }
  0x1b   : > { %937 = vset.pattern.permute.xlu0 %v1085_v0  ;;  %938 = vset.pattern.permute.xlu1 %v1085_v0  ;;  %v471_v4 = vld [vmem:[#allocation2] sm:$0xff]  ;;  %v474_v5 = vld [vmem:[%s1245_s3 + $0x8] sm:$0xff]  ;;  %vm535_vm1 = vcmask 1045504   ;;  %v520_v10 = vld [vmem:[#allocation4 + $0x28] sm:$0xff]  ;;  %vm531_vm2 = vcmask 506880   ;;  %s1086_s19 = smov 127  }
  0x1c   : > { %s1256_s14 = smov (!%p445_p6, %s1149_s14), 1  ;;  %477 = vperm.xlu0 %937, %v473_v1   ;;  %v472_v6 = vld [vmem:[#allocation2 + $0x8] sm:$0xff]  ;;  %v604_v7 = vld [vmem:[%s1249_s7] sm:$0xff]  ;;  %v519_v11 = vld [vmem:[#allocation4 + $0x20] sm:$0xff]  ;;  %s1087_s20 = smov 1   ;;  %v587_v36 = vand.u32 127, %v586_v34 }
  0x1d   : > { %s1205_s17 = sshll.u32 %s1256_s14, 4  ;;  %v522_v8 = vld [vmem:[#allocation4 + $0x38] sm:$0x3f]  ;;  %v521_v9 = vld [vmem:[#allocation4 + $0x30] sm:$0xff]  ;;  %v528_v16 = vld [vmem:[#allocation6 + $0x28] sm:$0xff]  ;;  %s852_s11 = sshll.u32 %s1256_s14, 3 }
  0x1e   : > { %s449_s23 = scalar_lea.vmem %s1242_s0, %s1205_s17  ;;  %863 = vmatpush.msk.msra.mxu2 %vm535_vm1, %v522_v8  ;;  %v530_v12 = vld [vmem:[#allocation6 + $0x38] sm:$0x3f]  ;;  %v529_v14 = vld [vmem:[#allocation6 + $0x30] sm:$0xff]  ;;  %v516_v17 = vld [vmem:[#allocation4 + $0x8] sm:$0xff]  ;;  %s453_s16 = scalar_lea.vmem %s1243_s1, %s852_s11  ;;  %vm881_vm3 = vcmp.ne.s32.totalorder %v587_v36, 127  ;;  %vm882_vm4 = vcmp.ne.s32.totalorder %v587_v36, 0 }
  0x1f   : > { %v470_v2 = vld [vmem:[%s449_s23 + $0x8] sm:$0xff]  ;;  %v469_v3 = vld [vmem:[%s449_s23] sm:$0xff]  ;;  %861 = vmatpush.msk.msra.mxu1 %vm535_vm1, %v530_v12  ;;  %v527_v18 = vld [vmem:[#allocation6 + $0x20] sm:$0xff]  ;;  %vm616_vm5 = vcmask 392192   ;;  %s458_s21 = scalar_lea.vmem %s1250_s8, %s1205_s17  ;;  %s463_s26 = scalar_lea.vmem %s1251_s9, %s1205_s17  ;;  %vm652_vm6 = vcmask 7168  }
  0x20   : > { %506 = vmatpush.msra.mxu0 %v470_v2  ;;  %574 = vmatpush.msra.mxu2 %v521_v9  ;;  %v518_v13 = vld [vmem:[#allocation4 + $0x18] sm:$0xff]  ;;  %v517_v15 = vld [vmem:[#allocation4 + $0x10] sm:$0xff]  ;;  %v515_v19 = vld [vmem:[#allocation4] sm:$0xff]  ;;  %s468_s29 = scalar_lea.vmem %s1252_s10, %s1205_s17 }
  0x21   : > { %548 = vmatpush.msra.mxu1 %v529_v14  ;;  %v526_v20 = vld [vmem:[#allocation6 + $0x18] sm:$0xff]  ;;  %v525_v21 = vld [vmem:[#allocation6 + $0x10] sm:$0xff]  ;;  %v524_v22 = vld [vmem:[#allocation6 + $0x8] sm:$0xff] }
  0x22   : > { %507 = vmatpush.msra.mxu0 %v469_v3  ;;  %575 = vmatpush.msra.mxu2 %v520_v10  ;;  %v523_v23 = vld [vmem:[#allocation6] sm:$0xff]  ;;  %v585_v30 = vld [vmem:[%s453_s16] sm:$0xff]  ;;  %v605_v35 = vld [vmem:[%s1249_s7 + $0x8] sm:$0xff] }
  0x23   : > { %859 = vmatmul.msk.f32.vlgmr.msra.gmra.mxu0 %vm485_vm0, %v471_v4  ;;  %549 = vmatpush.msra.mxu1 %v528_v16  ;;  %v602_v41 = vld [vmem:[#allocation7] sm:$0xff]  ;;  %v603_v42 = vld [vmem:[#allocation7 + $0x8] sm:$0xff] }
  0x24   : > { %482 = vperm.xlu0 %937, %v474_v5   ;;  %576 = vmatpush.msra.mxu2 %v519_v11 }
  0x25   : > { %550 = vmatpush.msra.mxu1 %v527_v18  ;;  %593 = vrot.lane.b32.xlu2 %v585_v30, %s1086_s19 }
  0x26   : > { %577 = vmatpush.msra.mxu2 %v518_v13 }
  0x27   : > { %551 = vmatpush.msra.mxu1 %v526_v20 }
  0x28   : > { %578 = vmatpush.msra.mxu2 %v517_v15 }
  0x29   : > { %552 = vmatpush.msra.mxu1 %v525_v21 }
  0x2a   : > { %579 = vmatpush.msra.mxu2 %v516_v17 }
  0x2b   : > { %860 = vmatmul.msk.f32.gmra.mxu0 %vm485_vm0, %v472_v6  ;;  %553 = vmatpush.msra.mxu1 %v524_v22 }
  0x2c   : > { %608 = vperm.xlu0 %937, %v604_v7   ;;  %580 = vmatpush.msra.mxu2 %v515_v19 }
  0x2d   : > { %554 = vmatpush.msra.mxu1 %v523_v23  ;;  %589 = vrot.lane.b32.xlu2 %v585_v30, %s1087_s20 }
  0x7f   : > { %v594_v38 = vpop.permute.xlu2 %593 }
  0x87   : > { %v590_v40 = vpop.permute.xlu2 %589 }
  0x8e   : > { %v478_v24 = vpop.permute.xlu0 %477 }
  0x96   : > { %v483_v27 = vpop.permute.xlu0 %482 }
  0x9e   : > { %v609_v43 = vpop.permute.xlu0 %608 }
  0xa0   : > { %v509_v25 = vpop.f32.mrf.mxu0 }
  0xa1   : > { %v510_v26 = vadd.f32 %v509_v25, %v478_v24 }
  0xa3   : > { %864 = vmatmul.msk.f32.vlgmr.msra.gmra.mxu2 %vm531_vm2, %v510_v26 }
  0xa8   : > { %v512_v28 = vpop.f32.mrf.mxu0 }
  0xa9   : > { %v513_v29 = vadd.f32 %v512_v28, %v483_v27 }
  0xab   : > { %862 = vmatmul.msk.f32.vlgmr.msra.gmra.mxu1 %vm531_vm2, %v513_v29 }
 0x126   : > { %v582_v31 = vpop.f32.mrf.mxu2 }
 0x128   : > { %v556_v32 = vpop.f32.mrf.mxu1 }
 0x129   : > { %v583_v33 = vadd.f32 %v582_v31, %v556_v32 }
 0x12b   : > { %599 = vrot.lane.b32.xlu1 %v583_v33, %s1086_s19 }
 0x133   : > { %596 = vrot.lane.b32.xlu1 %v583_v33, %s1087_s20 }
 0x13b   : > { %613 = vperm.xlu1 %938, %v605_v35  }
 0x19d   : > { %v600_v37 = vpop.permute.xlu1 %599 }
 0x19e   : > { %866 = vmatpush.msk.msra.mxu3 %vm881_vm3, %v600_v37 }
 0x1a0   : > { %634 = vmatpush.msra.mxu3 %v583_v33 }
 0x1a5   : > { %v597_v39 = vpop.permute.xlu1 %596 }
 0x1a6   : > { %868 = vmatpush.msk.msra.mxu3 %vm882_vm4, %v597_v39 }
 0x1a8   : > { %870 = vmatpush.msk.msra.mxu3 %vm881_vm3, %v594_v38 }
 0x1aa   : > { %637 = vmatpush.msra.mxu3 %v585_v30 }
 0x1ac   : > { %872 = vmatpush.msk.msra.mxu3 %vm882_vm4, %v590_v40 }
 0x1ad   : > { %873 = vmatmul.msk.f32.vlgmr.msra.gmra.mxu3 %vm616_vm5, %v602_v41  ;;  %v614_v47 = vpop.permute.xlu1 %613 }
 0x1b5   : > { %874 = vmatmul.msk.f32.gmra.mxu3 %vm616_vm5, %v603_v42 }
 0x230   : > { %v640_v44 = vpop.f32.mrf.mxu3 }
 0x231   : > { %v641_v45 = vadd.f32 %v640_v44, %v609_v43 }
 0x233   : > { %646 = vst [vmem:[%s458_s21] sm:$0xff] %v641_v45  ;;  %648 = vadd.xlane.f32.xlu2 %v641_v45  ;;  %v655_v46 = vmul.f32 %v641_v45, %v641_v45 }
 0x235   : > { %657 = vadd.xlane.f32.xlu1 %v655_v46 }
 0x238   : > { %v643_v48 = vpop.f32.mrf.mxu3 }
 0x239   : > { %v644_v49 = vadd.f32 %v643_v48, %v614_v47 }
 0x23b   : > { %647 = vst [vmem:[%s458_s21 + $0x8] sm:$0xff] %v644_v49  ;;  %650 = vadd.xlane.f32.xlu0 %v644_v49  ;;  %v656_v50 = vmul.f32 %v644_v49, %v644_v49 }
 0x23d   : > { %659 = vadd.xlane.f32.xlu2 %v656_v50 }
 0x2a6   : > { %v649_v51 = vpop.xlane.xlu2 %648 }
 0x2a7   : > { %653 = vst.msk [vmem:[%s463_s26] sm:$0xff] %vm652_vm6, %v649_v51 }
 0x2a8   : > { %v658_v52 = vpop.xlane.xlu1 %657 }
 0x2a9   : > { %661 = vst.msk [vmem:[%s468_s29] sm:$0xff] %vm652_vm6, %v658_v52 }
 0x2ae   : > { %v651_v53 = vpop.xlane.xlu0 %650 }
 0x2af   : > { %654 = vst.msk [vmem:[%s463_s26 + $0x8] sm:$0xff] %vm652_vm6, %v651_v53 }
 0x2b0   : > { %v660_v54 = vpop.xlane.xlu2 %659 }
 0x2b1   : > { %662 = vst.msk [vmem:[%s468_s29 + $0x8] sm:$0xff] %vm652_vm6, %v660_v54 }
 0x2b2 PF: > { %s24_s13 = sadd.s32 1, %s1077_s13  }
 0x2b3   : > { %p21_p7 = scmp.ge.s32.totalorder %s24_s13, 4  }
 0x2b5   :  { %23 = sbr.rel (!%p21_p7) target bundleno = 3 (0x3), region = 126 }
 0x2ba   :  { %716 = vsyncpa [#allocation3], 1 }
 0x2bb   :  { %718 = vsyncpa [#allocation3 + $0x1], 1 }
 0x2bc   :  { %719 = vsyncpa [#allocation5], 1 }
 0x2bd   :  { %720 = vsyncpa [#allocation8], 1 }

// kernel: up_forward.5
= control target key start
LH: loop header
LB: loop body
LE: loop exit
PB: predicated region body
PF: predicated region fallthrough
CT: control target
= control target key end

     0   :  { %9 = vsyncpa [#allocation3], 0  ;;  %s608_s0 = inlined_call_operand.vmem [shape: f32[2,16,128], index: 0, kind: input, shape index: {}]   ;;  %s609_s1 = inlined_call_operand.vmem [shape: f32[16,1], index: 1, kind: input, shape index: {}]   ;;  %s610_s2 = inlined_call_operand.vmem [shape: f32[16,1], index: 2, kind: input, shape index: {}]   ;;  %s611_s3 = inlined_call_operand.vmem [shape: f32[2,16,1], index: 3, kind: input, shape index: {}]   ;;  %s612_s4 = inlined_call_operand.hbm [shape: f32[2,16,128], index: 4, kind: output, shape index: {}]  }
   0x1   :  { %11 = vsyncpa [#allocation3 + $0x1], 0  ;;  %s508_s15 = smov 0   ;;  %s510_s16 = smov 0  }
   0x2   :  { %s512_s17 = smov 0   ;;  %s514_s18 = smov 0  }
   0x3 LB: > { %s529_s19 = sadd.s32 4294967295, %s478_s18   ;;  %s354_s20 = sadd.s32 4294967294, %s478_s18   ;;  %s478_s18 = sphi %s514_s18, %s618_s18   ;;  %s474_s17 = sphi %s512_s17, %s617_s17   ;;  %s470_s16 = sphi %s510_s16, %s616_s16   ;;  %s466_s15 = sphi %s508_s15, %s615_s15  }
   0x4   : > { %s533_s21 = sadd.s32 1, %s478_s18   ;;  %s118_s22 = sadd.s32 1, %s474_s17 }
   0x5   : > { %s115_s23 = ssub.s32 %s478_s18, %s533_s21  ;;  %p128_p0 = scmp.ne.s32.totalorder %s474_s17, %s470_s16 }
   0x6   : > { %p116_p1 = scmp.eq.s32.totalorder %s115_s23, 0  ;;  %p129_p2 = scmp.eq.s32.totalorder %s529_s19, 1 }
   0x7   : > { %p134_p3 = scmp.ne.s32.totalorder %s470_s16, %s466_s15  ;;  %p135_p4 = scmp.eq.s32.totalorder %s354_s20, 1 }
   0x8   : > { %s544_s24 = scalar_select %p116_p1, %s474_s17, %s118_s22  }
   0x9   : > { %p546_p5 = por %p129_p2, %p128_p0  ;;  %p550_p6 = por %p135_p4, %p134_p3 }
   0xa   : > { %p357_p7 = scmp.ge.s32.totalorder %s478_s18, 1  ;;  %p175_p8 = scmp.lt.s32.totalorder %s478_s18, 3 }
   0xc   : > { %p176_p9 = pnand %p357_p7, %p175_p8 }
   0xd   : > { %p206_p10 = scmp.lt.s32.totalorder (!%p176_p9), %s529_s19, 1  ;;  %s203_s23 = sand.u32 (!%p176_p9), 1, %s470_s16  }
   0xe   : > { %179 = sbr.rel (%p176_p9) target bundleno = 156 (0x9c), region = 36  ;;  %s358_s27 = sshll.u32 (!%p176_p9), %s203_s23, 4 }
   0xf   : > { %s370_s28 = sshll.u32 (!%p176_p9), %s529_s19, 4  ;;  %s205_s29 = scalar_lea.vmem (!%p176_p9), [#allocation2], %s358_s27 }
  0x10   : > { %s277_s7 = sshll.u32 (!%p176_p9), %s205_s29, 4  ;;  %s436_s13 = scalar_lea.hbm (!%p176_p9), %s612_s4, 32  ;;  %s278_s7 = int_to_ptr.vmem [resolvable:$true] %s277_s7 }
  0x13   : > { %v232_v0 = vld [vmem:[%s610_s2] sm:$0xff]  ;;  %v480_v2 = vmov 0   ;;  %s207_s5 = scalar_select %p206_p10, %s529_s19, 1  ;;  %v233_v4 = vld [vmem:[%s610_s2 + $0x8] sm:$0xff] }
  0x14   : > { %v218_v1 = vld [vmem:[%s609_s1] sm:$0xff]  ;;  %414 = vset.pattern.permute.xlu1 %v480_v2  ;;  %413 = vset.pattern.permute.xlu0 %v480_v2  ;;  %v219_v5 = vld [vmem:[%s609_s1 + $0x8] sm:$0xff]  ;;  %s265_s19 = scalar_lea.sflag [#allocation3], %s203_s23 }
  0x15   : > { %236 = vperm.xlu1 %414, %v232_v0   ;;  %222 = vperm.xlu0 %413, %v218_v1   ;;  %s368_s6 = sshll.u32 %s207_s5, 4 }
  0x16   : > { %415 = vset.pattern.permute.xlu2 %v480_v2  ;;  %s215_s9 = scalar_lea.vmem %s611_s3, %s368_s6  ;;  %s210_s22 = scalar_lea.vmem %s608_s0, %s368_s6 }
  0x17   : > { %v246_v3 = vld [vmem:[%s215_s9] sm:$0xff]  ;;  %v247_v6 = vld [vmem:[%s215_s9 + $0x8] sm:$0xff]  ;;  %s276_s6 = scalar_lea.hbm %s612_s4, %s370_s28 }
  0x18   : > { %250 = vperm.xlu2 %415, %v246_v3   ;;  %v216_v7 = vld [vmem:[%s210_s22] sm:$0xff]  ;;  %v217_v14 = vld [vmem:[%s210_s22 + $0x8] sm:$0xff]  ;;  %s279_s8 = sshll.u32 %s276_s6, 4  ;;  %s280_s8 = int_to_ptr.hbm [resolvable:$true] %s279_s8 }
  0x19   : > { %s430_s9 = sshra.s32 %s280_s8, 4  ;;  %s431_s9 = int_to_ptr.hbm [resolvable:$true] %s430_s9 }
  0x1a   : > { %s432_s10 = scalar_lea.hbm %s431_s9, 16  ;;  %p437_p0 = scmp.lt.s32.totalorder %s431_s9, %s612_s4 }
  0x1b   : > { %p433_p11 = scmp.ne.s32.totalorder %s431_s9, %s432_s10  ;;  %p438_p1 = scmp.lt.s32.totalorder %s436_s13, %s432_s10 }
  0x1d   : > { %241 = vperm.xlu1 %414, %v233_v4   ;;  %227 = vperm.xlu0 %413, %v219_v5   ;;  %p434_p12 = pnand %p433_p11, %p546_p5  ;;  %p439_p2 = por %p438_p1, %p437_p0 }
  0x1f   : > { %p435_p13 = pneg %p434_p12 }
  0x20   : > { %255 = vperm.xlu2 %415, %v247_v6  }
  0x21   : > { %p440_p3 = pnand %p439_p2, %p435_p13 }
  0x72   : > { %v251_v11 = vpop.permute.xlu2 %250 }
  0x7a   : > { %v256_v20 = vpop.permute.xlu2 %255 }
  0x87   : > { %v237_v8 = vpop.permute.xlu1 %236  ;;  %v223_v9 = vpop.permute.xlu0 %222 }
  0x88   : > { %v230_v10 = vmul.f32 %v223_v9, %v216_v7 }
  0x8a   : > { %v244_v12 = vadd.f32 %v237_v8, %v230_v10 }
  0x8c   : > { %v258_v13 = vmul.f32 %v251_v11, %v244_v12 }
  0x8e   : > { %v260_v15 = vmax.f32 %v258_v13, 0.0 }
  0x8f   : > { %v228_v16 = vpop.permute.xlu0 %227  ;;  %v242_v18 = vpop.permute.xlu1 %241 }
  0x90   : > { %262 = vst [vmem:[%s205_s29] sm:$0xff] %v260_v15  ;;  %v231_v17 = vmul.f32 %v228_v16, %v217_v14 }
  0x92   : > { %v245_v19 = vadd.f32 %v242_v18, %v231_v17 }
  0x94   : > { %v259_v21 = vmul.f32 %v256_v20, %v245_v19 }
  0x96   : > { %v261_v22 = vmax.f32 %v259_v21, 0.0 }
  0x98   : > { %263 = vst [vmem:[%s205_s29 + $0x8] sm:$0xff] %v261_v22 }
  0x99   : > { %443 = shalt.err (!%p440_p3)
}
  0x9a   : > { %s481_s22 = smov 128   ;;  %s482_s23 = smov 8  }
  0x9b   : > { %371 = dma.vmem_to_hbm [thread:$0]  (%p546_p5), %s278_s7, 256, %s280_s8, %s265_s19, %s481_s22, %s481_s22, %s482_s23  }
  0x9c PF: > { %p377_p4 = scmp.ge.s32.totalorder %s478_s18, 2  ;;  %s294_s27 = sand.u32 1, %s466_s15  }
  0x9d   : > { %s295_s28 = scalar_lea.sflag [#allocation3], %s294_s27 }
  0x9e   : > { %p374_p7 = pnand %p377_p4, %p550_p6 }
  0xa0   : > { %p375_p8 = pneg %p374_p7 }
  0xa2   : > { %461 = dma.done.wait (%p375_p8), %s295_s28, 256  }
  0xa3   : > { %463 = vsyncadd (%p375_p8), %s295_s28, 4294967040  ;;  %p14_p9 = scmp.ge.s32.totalorder %s533_s21, 4   ;;  %s615_s15 = smov %s470_s16 }
  0xa4   : > { %s616_s16 = smov %s474_s17  ;;  %s617_s17 = smov %s544_s24 }
  0xa5   : > { %s618_s18 = smov %s533_s21  ;;  %16 = sbr.rel (!%p14_p9) target bundleno = 3 (0x3), region = 74 }
  0xaa   :  { %301 = vsyncpa [#allocation3], 1 }
  0xab   :  { %303 = vsyncpa [#allocation3 + $0x1], 1 }

// kernel: up_forward.4
= control target key start
LH: loop header
LB: loop body
LE: loop exit
PB: predicated region body
PF: predicated region fallthrough
CT: control target
= control target key end

     0   :  { %s636_s24 = smov 0   ;;  %s689_s0 = inlined_call_operand.vmem [shape: f32[2,16,128], index: 0, kind: input, shape index: {}]   ;;  %s690_s1 = inlined_call_operand.vmem [shape: f32[16,1], index: 1, kind: input, shape index: {}]   ;;  %s691_s2 = inlined_call_operand.vmem [shape: f32[16,1], index: 2, kind: input, shape index: {}]   ;;  %s692_s3 = inlined_call_operand.vmem [shape: f32[16,48], index: 3, kind: input, shape index: {}]   ;;  %s693_s4 = inlined_call_operand.vmem [shape: f32[16,1], index: 4, kind: input, shape index: {}]   ;;  %s694_s5 = inlined_call_operand.vmem [shape: f32[2,16,128], index: 5, kind: output, shape index: {0}]   ;;  %s695_s6 = inlined_call_operand.vmem [shape: f32[2,16,1], index: 6, kind: output, shape index: {1}]   ;;  %s696_s7 = inlined_call_operand.vmem [shape: f32[2,16,1], index: 7, kind: output, shape index: {2}]  }
   0x1 LB: > { %s534_s25 = sadd.s32 4294967295, %s591_s24   ;;  %p538_p0 = scmp.ge.s32.totalorder %s591_s24, 1  ;;  %s591_s24 = sphi %s636_s24, %s18_s24  }
   0x2   : > { %p242_p1 = scmp.lt.s32.totalorder %s591_s24, 3 }
   0x4   : > { %p243_p2 = pnand %p538_p0, %p242_p1 }
   0x5   : > { %p284_p3 = scmp.lt.s32.totalorder (!%p243_p2), %s534_s25, 1  ;;  %s594_s15 = smov (!%p243_p2), 1  }
   0x6   : > { %246 = sbr.rel (%p243_p2) target bundleno = 511 (0x1ff), region = 40  ;;  %s595_s16 = smov (!%p243_p2), 127  }
   0xb   : > { %v321_v0 = vld [vmem:[%s691_s2 + $0x8] sm:$0xff]  ;;  %v593_v2 = vmov 0   ;;  %v320_v3 = vld [vmem:[%s691_s2] sm:$0xff]  ;;  %s698_s25 = smov (!%p284_p3, %s534_s25), 1  ;;  %v336_v18 = vlaneseq  ;;  %vm366_vm2 = vcmask 392192   ;;  %vm402_vm3 = vcmask 7168  }
   0xc   : > { %v307_v1 = vld [vmem:[%s690_s1 + $0x8] sm:$0xff]  ;;  %583 = vset.pattern.permute.xlu1 %v593_v2  ;;  %582 = vset.pattern.permute.xlu0 %v593_v2  ;;  %v306_v4 = vld [vmem:[%s690_s1] sm:$0xff]  ;;  %s656_s11 = sshll.u32 %s698_s25, 4 }
   0xd   : > { %329 = vperm.xlu1 %583, %v321_v0   ;;  %315 = vperm.xlu0 %582, %v307_v1   ;;  %s288_s14 = scalar_lea.vmem %s689_s0, %s656_s11  ;;  %v355_v16 = vld [vmem:[%s693_s4 + $0x8] sm:$0xff]  ;;  %v337_v19 = vand.u32 127, %v336_v18  ;;  %v354_v21 = vld [vmem:[%s693_s4] sm:$0xff]  ;;  %s293_s28 = scalar_lea.vmem %s694_s5, %s656_s11 }
   0xe   : > { %584 = vset.pattern.permute.xlu2 %v593_v2  ;;  %v305_v5 = vld [vmem:[%s288_s14 + $0x8] sm:$0xff]  ;;  %v304_v11 = vld [vmem:[%s288_s14] sm:$0xff]  ;;  %s298_s8 = scalar_lea.vmem %s695_s6, %s656_s11  ;;  %s303_s12 = scalar_lea.vmem %s696_s7, %s656_s11 }
   0xf   : > { %vm563_vm0 = vcmp.ne.s32.totalorder %v337_v19, 127  ;;  %vm564_vm1 = vcmp.ne.s32.totalorder %v337_v19, 0  ;;  %v353_v24 = vld [vmem:[%s692_s3 + $0x8] sm:$0xff]  ;;  %v352_v25 = vld [vmem:[%s692_s3] sm:$0xff] }
  0x15   : > { %324 = vperm.xlu1 %583, %v320_v3   ;;  %310 = vperm.xlu0 %582, %v306_v4  }
  0x7f   : > { %v330_v6 = vpop.permute.xlu1 %329  ;;  %v316_v7 = vpop.permute.xlu0 %315 }
  0x80   : > { %v319_v8 = vmul.f32 %v316_v7, %v305_v5 }
  0x82   : > { %v333_v9 = vadd.f32 %v330_v6, %v319_v8 }
  0x84   : > { %v335_v10 = vmax.f32 %v333_v9, 0.0 }
  0x86   : > { %341 = vrot.lane.b32.xlu0 %v335_v10, %s594_s15  ;;  %348 = vrot.lane.b32.xlu2 %v335_v10, %s595_s16 }
  0x87   : > { %v311_v12 = vpop.permute.xlu0 %310  ;;  %v325_v14 = vpop.permute.xlu1 %324 }
  0x88   : > { %v318_v13 = vmul.f32 %v311_v12, %v304_v11 }
  0x8a   : > { %v332_v15 = vadd.f32 %v325_v14, %v318_v13 }
  0x8c   : > { %v334_v17 = vmax.f32 %v332_v15, 0.0 }
  0x8e   : > { %363 = vperm.xlu0 %582, %v355_v16   ;;  %339 = vrot.lane.b32.xlu1 %v334_v17, %s594_s15 }
  0x8f   : > { %346 = vrot.lane.b32.xlu2 %v334_v17, %s595_s16 }
  0x97   : > { %358 = vperm.xlu2 %584, %v354_v21  }
  0xe0   : > { %v349_v20 = vpop.permute.xlu2 %348 }
  0xe1   : > { %548 = vmatpush.msk.msra.mxu0 %vm563_vm0, %v349_v20  ;;  %565 = vmatpush.msk.msra.mxu1 %vm563_vm0, %v349_v20 }
  0xe9   : > { %v347_v22 = vpop.permute.xlu2 %346 }
  0xea   : > { %550 = vmatpush.msk.msra.mxu0 %vm563_vm0, %v347_v22  ;;  %566 = vmatpush.msk.msra.mxu1 %vm563_vm0, %v347_v22 }
  0xec   : > { %385 = vmatpush.msra.mxu0 %v335_v10  ;;  %567 = vmatpush.msra.mxu1 %v335_v10 }
  0xee   : > { %386 = vmatpush.msra.mxu0 %v334_v17  ;;  %568 = vmatpush.msra.mxu1 %v334_v17 }
  0xf1   : > { %v359_v27 = vpop.permute.xlu2 %358 }
  0xf8   : > { %v342_v23 = vpop.permute.xlu0 %341 }
  0xf9   : > { %552 = vmatpush.msk.msra.mxu0 %vm564_vm1, %v342_v23  ;;  %569 = vmatpush.msk.msra.mxu1 %vm564_vm1, %v342_v23 }
 0x100   : > { %v340_v26 = vpop.permute.xlu1 %339  ;;  %v364_v28 = vpop.permute.xlu0 %363 }
 0x101   : > { %554 = vmatpush.msk.msra.mxu0 %vm564_vm1, %v340_v26  ;;  %570 = vmatpush.msk.msra.mxu1 %vm564_vm1, %v340_v26 }
 0x102   : > { %556 = vmatmul.msk.f32.vlgmr.msra.gmra.mxu1 %vm366_vm2, %v353_v24  ;;  %555 = vmatmul.msk.f32.vlgmr.msra.gmra.mxu0 %vm366_vm2, %v352_v25 }
 0x17f   : > { %v393_v29 = vpop.f32.mrf.mxu1  ;;  %v390_v30 = vpop.f32.mrf.mxu0 }
 0x180   : > { %v394_v31 = vadd.f32 %v393_v29, %v364_v28  ;;  %v391_v32 = vadd.f32 %v390_v30, %v359_v27 }
 0x182   : > { %397 = vst [vmem:[%s293_s28 + $0x8] sm:$0xff] %v394_v31  ;;  %400 = vadd.xlane.f32.xlu2 %v394_v31  ;;  %398 = vadd.xlane.f32.xlu1 %v391_v32  ;;  %v405_v33 = vmul.f32 %v391_v32, %v391_v32  ;;  %v406_v34 = vmul.f32 %v394_v31, %v394_v31 }
 0x183   : > { %396 = vst [vmem:[%s293_s28] sm:$0xff] %v391_v32 }
 0x184   : > { %407 = vadd.xlane.f32.xlu0 %v405_v33 }
 0x18a   : > { %409 = vadd.xlane.f32.xlu2 %v406_v34 }
 0x1f5   : > { %v401_v35 = vpop.xlane.xlu2 %400  ;;  %v399_v36 = vpop.xlane.xlu1 %398 }
 0x1f6   : > { %404 = vst.msk [vmem:[%s298_s8 + $0x8] sm:$0xff] %vm402_vm3, %v401_v35 }
 0x1f7   : > { %403 = vst.msk [vmem:[%s298_s8] sm:$0xff] %vm402_vm3, %v399_v36  ;;  %v408_v37 = vpop.xlane.xlu0 %407 }
 0x1f8   : > { %411 = vst.msk [vmem:[%s303_s12] sm:$0xff] %vm402_vm3, %v408_v37 }
 0x1fd   : > { %v410_v38 = vpop.xlane.xlu2 %409 }
 0x1fe   : > { %412 = vst.msk [vmem:[%s303_s12 + $0x8] sm:$0xff] %vm402_vm3, %v410_v38 }
 0x1ff PF: > { %s18_s24 = sadd.s32 1, %s591_s24  }
 0x200   : > { %p15_p4 = scmp.ge.s32.totalorder %s18_s24, 4  }
 0x202   :  { %17 = sbr.rel (!%p15_p4) target bundleno = 1 (0x1), region = 94 }

</bundles_post_ra>
